<compile_context>
chip_gen: v7x
topology: tpu7x:2x2x1
jax: 0.10.0
libtpu: 0.0.40
codegen_flags: <defaults>
</compile_context>

<pallas_src>
import math

import jax
import jax.numpy as jnp
from jax.experimental import pallas as pl
from jax.experimental.pallas import tpu as pltpu


# --------------------------------------------------------------------------
# Kernel 1: (residual add +) LayerNorm, tiled over (batch, L-chunks)
# --------------------------------------------------------------------------
def _ln_math(x, w, b):
    xf = x.astype(jnp.float32)                       # stats in f32 (bf16-input safe)
    mean = jnp.mean(xf, axis=-1, keepdims=True)
    cent = xf - mean
    var = jnp.mean(cent * cent, axis=-1, keepdims=True)
    return (cent * jax.lax.rsqrt(var + 1e-5) * w.astype(jnp.float32)
            + b.astype(jnp.float32))


def _ln_kernel(h_ref, w_ref, b_ref, o_ref):
    o_ref[...] = _ln_math(h_ref[...], w_ref[...], b_ref[...]).astype(o_ref.dtype)


def _add_ln_kernel(h_ref, r_ref, w_ref, b_ref, o_ref, res_ref):
    res = r_ref[...] + h_ref[...]
    res_ref[...] = res
    o_ref[...] = _ln_math(res, w_ref[...], b_ref[...]).astype(o_ref.dtype)


def _ln_specs(D, tile_l):
    x_spec = pl.BlockSpec((1, tile_l, D), lambda b, l: (b, l, 0))
    w_spec = pl.BlockSpec((1, D), lambda b, l: (0, 0))
    return x_spec, w_spec


def layernorm(h, w, b, tile_l=None):
    B, L, D = h.shape
    tile_l = min(L, 256) if tile_l is None else tile_l
    assert L % tile_l == 0
    x_spec, w_spec = _ln_specs(D, tile_l)
    return pl.pallas_call(
        _ln_kernel,
        out_shape=jax.ShapeDtypeStruct((B, L, D), h.dtype),
        grid=(B, L // tile_l),
        in_specs=[x_spec, w_spec, w_spec],
        out_specs=x_spec,
        compiler_params=pltpu.CompilerParams(
            dimension_semantics=("parallel", "parallel")),
    )(h, w, b)


def add_layernorm(h, r, w, b, tile_l=None):
    B, L, D = h.shape
    tile_l = min(L, 256) if tile_l is None else tile_l
    assert L % tile_l == 0
    x_spec, w_spec = _ln_specs(D, tile_l)
    return pl.pallas_call(
        _add_ln_kernel,
        out_shape=(jax.ShapeDtypeStruct((B, L, D), h.dtype),
                   jax.ShapeDtypeStruct((B, L, D), h.dtype)),
        grid=(B, L // tile_l),
        in_specs=[x_spec, x_spec, w_spec, w_spec],
        out_specs=(x_spec, x_spec),
        compiler_params=pltpu.CompilerParams(
            dimension_semantics=("parallel", "parallel")),
    )(h, r, w, b)


# --------------------------------------------------------------------------
# Kernel 2: Mamba mixer (one batch element per parallel grid step)
# --------------------------------------------------------------------------
def _mamba_kernel(x_ref, w_in_ref, convw_ref, convb_ref, w_x_ref, dtw_ref,
                  dtb_ref, alogT_ref, dpar_ref, wout_ref, o_ref,
                  dA_sc, dBu_sc, st_sc):
    L = x_ref.shape[1]
    d_conv, d_inner = convw_ref.shape
    d_state = alogT_ref.shape[0]
    dt_rank = dtw_ref.shape[0]
    chunk = dA_sc.shape[0]
    n_chunks = L // chunk

    # ---- in_proj: one fused bf16 MXU matmul, slice x / z halves -------------
    xb = x_ref[0].astype(jnp.bfloat16)                                      # (L, D)
    xz = jnp.dot(xb, w_in_ref[...], preferred_element_type=jnp.float32)     # (L, 2*d_inner)
    x_in = xz[:, :d_inner]
    z = xz[:, d_inner:]

    # ---- causal depthwise conv along L: pad once + static shifted adds ------
    conv_w = convw_ref[...]                                                 # (d_conv, d_inner)
    xpad = jnp.concatenate(
        [jnp.zeros((d_conv - 1, d_inner), jnp.float32), x_in], axis=0)      # (L+d_conv-1, d_inner)
    acc = convb_ref[...]                                                    # (1, d_inner) broadcast
    for k in range(d_conv):                                                 # static, d_conv = 4
        acc = acc + xpad[k:k + L, :] * conv_w[k:k + 1, :]
    x_act = jax.nn.silu(acc)                                                # (L, d_inner) f32

    # ---- x_proj: one fused bf16 matmul, slice dt / B / C --------------------
    dbc = jnp.dot(x_act.astype(jnp.bfloat16), w_x_ref[...],
                  preferred_element_type=jnp.float32)                       # (L, dt_rank+2*d_state)
    dt_low = dbc[:, :dt_rank]
    Bm = dbc[:, dt_rank:dt_rank + d_state]
    Cm = dbc[:, dt_rank + d_state:]

    delta = jax.nn.softplus(
        jnp.dot(dt_low.astype(jnp.bfloat16), dtw_ref[...],
                preferred_element_type=jnp.float32) + dtb_ref[...])         # (L, d_inner) f32

    # ---- selective scan: state is (d_state, d_inner)  (d_inner on lanes) ----
    A_T = -jnp.exp(alogT_ref[...])                                          # (d_state, d_inner)
    du = delta * x_act                                                      # delta * u
    state = jnp.zeros((d_state, d_inner), jnp.float32)

    for c in range(n_chunks):                     # static chunk loop, fori_loop inside
        lo = c * chunk
        delta_c = delta[lo:lo + chunk, :]
        B_c = Bm[lo:lo + chunk, :]
        C_c = Cm[lo:lo + chunk, :]

        # only (chunk, d_state, d_inner) is ever materialized
        dA_sc[...] = jnp.exp(delta_c[:, None, :] * A_T[None, :, :])
        dBu_sc[...] = B_c[:, :, None] * du[lo:lo + chunk, :][:, None, :]

        def step(t, st):
            st = dA_sc[t] * st + dBu_sc[t]
            st_sc[t] = st
            return st

        state = jax.lax.fori_loop(0, chunk, step, state)

        # y[t, e] = sum_n C[t, n] * state_t[n, e]   (sublane/XLU reduction)
        y_c = jnp.sum(st_sc[...] * C_c[:, :, None], axis=1)                 # (chunk, d_inner)
        y_c = y_c + x_act[lo:lo + chunk, :] * dpar_ref[...]                 # D * u skip
        y_c = y_c * jax.nn.silu(z[lo:lo + chunk, :])                        # SiLU(z) gate

        out_c = jnp.dot(y_c.astype(jnp.bfloat16), wout_ref[...],
                        preferred_element_type=jnp.float32)                 # (chunk, D)
        o_ref[0, lo:lo + chunk, :] = out_c.astype(o_ref.dtype)


def mamba_forward(x, p, chunk=None):
    B, L, D = x.shape
    d_state, d_inner = p["A_logT"].shape
    chunk = min(L, 128) if chunk is None else chunk
    assert L % chunk == 0, "sequence length must be a multiple of the scan chunk"

    def whole(arr):   # whole-weight-resident block (index_map constant over the grid)
        return pl.BlockSpec(arr.shape, lambda b: (0,) * arr.ndim)

    return pl.pallas_call(
        _mamba_kernel,
        out_shape=jax.ShapeDtypeStruct((B, L, D), x.dtype),
        grid=(B,),
        in_specs=[
            pl.BlockSpec((1, L, D), lambda b: (b, 0, 0)),
            whole(p["w_in"]), whole(p["conv_w"]), whole(p["conv_b"]),
            whole(p["w_x"]), whole(p["dt_w"]), whole(p["dt_b"]),
            whole(p["A_logT"]), whole(p["D"]), whole(p["w_out"]),
        ],
        out_specs=pl.BlockSpec((1, L, D), lambda b: (b, 0, 0)),
        scratch_shapes=[pltpu.VMEM((chunk, d_state, d_inner), jnp.float32)
                        for _ in range(3)],
        compiler_params=pltpu.CompilerParams(
            dimension_semantics=("parallel",),            # shard batch across TCs (v7x)
            vmem_limit_bytes=64 * 1024 * 1024),
    )(x, p["w_in"], p["conv_w"], p["conv_b"], p["w_x"], p["dt_w"], p["dt_b"],
      p["A_logT"], p["D"], p["w_out"])


# --------------------------------------------------------------------------
# Block.forward (fused_add_norm=False, residual_in_fp32=False, drop_path=Identity)
# --------------------------------------------------------------------------
def block_forward(hidden_states, residual, params, *, tile_l=None, chunk=None):
    if residual is None:
        # residual output is hidden_states itself (no zeros tensor, no extra HBM traffic)
        normed = layernorm(hidden_states, params["norm_w"], params["norm_b"], tile_l)
        new_residual = hidden_states
    else:
        normed, new_residual = add_layernorm(hidden_states, residual,
                                             params["norm_w"], params["norm_b"], tile_l)
    out = mamba_forward(normed, params, chunk=chunk)
    return out, new_residual


# --------------------------------------------------------------------------
# Deterministic parameter initialization (shapes from Mamba(dim) defaults:
# d_state=16, d_conv=4, expand=2, dt_rank=ceil(dim/16), conv_bias=True, bias=False)
# Weights are fused + pre-transposed for right-multiplication; MXU weights in bf16.
# --------------------------------------------------------------------------
def init_params(key, dim, d_state=16, d_conv=4, expand=2):
    d_inner = expand * dim
    dt_rank = math.ceil(dim / 16)
    ks = jax.random.split(key, 8)

    def rnd(k, shape, scale):
        return scale * jax.random.normal(k, shape, dtype=jnp.float32)

    w_in = rnd(ks[0], (2 * d_inner, dim), 1.0 / math.sqrt(dim))          # torch (out, in)
    x_proj_w = rnd(ks[1], (dt_rank + 2 * d_state, d_inner), 1.0 / math.sqrt(d_inner))
    dt_w = rnd(ks[6], (d_inner, dt_rank), 1.0 / math.sqrt(dt_rank))
    w_out = rnd(ks[7], (dim, d_inner), 1.0 / math.sqrt(d_inner))
    conv_w = rnd(ks[4], (d_inner, d_conv), 1.0 / math.sqrt(d_conv))
    A = jnp.tile(jnp.arange(1, d_state + 1, dtype=jnp.float32)[None, :], (d_inner, 1))

    return {
        "norm_w": 1.0 + rnd(ks[2], (1, dim), 0.05),
        "norm_b": rnd(ks[3], (1, dim), 0.05),
        "w_in": w_in.T.astype(jnp.bfloat16),        # (dim, 2*d_inner) : [x | z] columns
        "w_x": x_proj_w.T.astype(jnp.bfloat16),     # (d_inner, dt_rank+2*d_state) : [dt|B|C]
        "dt_w": dt_w.T.astype(jnp.bfloat16),        # (dt_rank, d_inner)
        "w_out": w_out.T.astype(jnp.bfloat16),      # (d_inner, dim)
        "conv_w": conv_w.T,                         # (d_conv, d_inner) f32
        "conv_b": rnd(ks[5], (1, d_inner), 0.1),
        "dt_b": jnp.log(jnp.expm1(jnp.full((1, d_inner), 0.01, jnp.float32))),
        "A_logT": jnp.log(A).T,                     # (d_state, d_inner) f32
        "D": jnp.ones((1, d_inner), jnp.float32),
    }


# --------------------------------------------------------------------------
# Pure-JAX reference (same math, same bf16 matmul inputs / f32 accumulation)
# --------------------------------------------------------------------------
def block_reference(hidden, residual, p):
    res = hidden if residual is None else residual + hidden
    xf = res.astype(jnp.float32)
    mean = xf.mean(-1, keepdims=True)
    var = ((xf - mean) ** 2).mean(-1, keepdims=True)
    normed = ((xf - mean) * jax.lax.rsqrt(var + 1e-5) * p["norm_w"][0]
              + p["norm_b"][0]).astype(hidden.dtype)

    B, L, D = normed.shape
    d_state, d_inner = p["A_logT"].shape
    dt_rank = p["dt_w"].shape[0]
    d_conv = p["conv_w"].shape[0]

    def mm(a, w):
        return jnp.einsum("...k,kn->...n", a.astype(jnp.bfloat16), w,
                          preferred_element_type=jnp.float32)

    xz = mm(normed, p["w_in"])
    x_in, z = xz[..., :d_inner], xz[..., d_inner:]

    xpad = jnp.pad(x_in, ((0, 0), (d_conv - 1, 0), (0, 0)))
    conv = sum(xpad[:, k:k + L, :] * p["conv_w"][k][None, None, :]
               for k in range(d_conv)) + p["conv_b"][0]
    x_act = jax.nn.silu(conv)

    dbc = mm(x_act, p["w_x"])
    dt_low = dbc[..., :dt_rank]
    Bm = dbc[..., dt_rank:dt_rank + d_state]
    Cm = dbc[..., dt_rank + d_state:]
    delta = jax.nn.softplus(mm(dt_low, p["dt_w"]) + p["dt_b"][0])

    A = -jnp.exp(p["A_logT"])                                   # (d_state, d_inner)
    deltaA = jnp.exp(jnp.einsum("ble,ne->blne", delta, A))
    deltaBu = jnp.einsum("ble,bln,ble->blne", delta, Bm, x_act)

    def step(state, inp):
        dA, dBu, c = inp
        state = dA * state + dBu
        return state, jnp.einsum("bne,bn->be", state, c)

    state0 = jnp.zeros((B, d_state, d_inner), jnp.float32)
    _, ys = jax.lax.scan(step, state0,
                         (deltaA.transpose(1, 0, 2, 3),
                          deltaBu.transpose(1, 0, 2, 3),
                          Cm.transpose(1, 0, 2)))
    y = ys.transpose(1, 0, 2)                                   # (B, L, d_inner)
    y = y + x_act * p["D"][0]
    y = y * jax.nn.silu(z)
    out = mm(y, p["w_out"]).astype(hidden.dtype)
    return out, res


if __name__ == "__main__":
    dim, B, L = 32, 2, 8
    key = jax.random.PRNGKey(0)
    kp, kh, kr = jax.random.split(key, 3)

    params = init_params(kp, dim)
    hidden = jax.random.normal(kh, (B, L, dim), jnp.float32)
    residual = jax.random.normal(kr, (B, L, dim), jnp.float32)

    # first block (residual=None) and subsequent block (residual provided);
    # chunk=4 exercises the multi-chunk scan path (2 chunks of 4 steps).
    out1, res1 = block_forward(hidden, None, params, chunk=4)
    out2, res2 = block_forward(hidden, residual, params, chunk=4)
    jax.block_until_ready((out1, res1, out2, res2))

    ref_out1, ref_res1 = block_reference(hidden, None, params)
    ref_out2, ref_res2 = block_reference(hidden, residual, params)
    # tolerance covers the bf16 MXU path (matmul inputs are bf16 in both kernel and ref)
    for got, ref in ((out1, ref_out1), (res1, ref_res1),
                     (out2, ref_out2), (res2, ref_res2)):
        err = float(jnp.max(jnp.abs(got - ref)))
        assert jnp.allclose(got, ref, rtol=1e-2, atol=1e-2), err

    print("KERNEL_OK")
</pallas_src>

<mosaic_0001>
module attributes {stable_mosaic.version = 11 : i64} {
  func.func @_ln_kernel(%arg0: i32, %arg1: i32, %arg2: memref<1x8x32xf32, #tpu.memory_space<vmem>>, %arg3: memref<1x32xf32, #tpu.memory_space<vmem>>, %arg4: memref<1x32xf32, #tpu.memory_space<vmem>>, %arg5: memref<1x8x32xf32, #tpu.memory_space<vmem>>) attributes {dimension_semantics = [#tpu.dimension_semantics<parallel>, #tpu.dimension_semantics<parallel>], iteration_bounds = array<i64: 2, 1>, scalar_prefetch = 0 : i64, scratch_operands = 0 : i64, tpu.core_type = #tpu.core_type<tc>, window_params = [{transform_indices = @transform_0, window_bounds = array<i64: 1, 8, 32>}, {pipeline_mode = #tpu.pipeline_mode<synchronous>, transform_indices = @transform_1, window_bounds = array<i64: 1, 32>}, {pipeline_mode = #tpu.pipeline_mode<synchronous>, transform_indices = @transform_2, window_bounds = array<i64: 1, 32>}, {transform_indices = @transform_3, window_bounds = array<i64: 1, 8, 32>}]} {
    %c0 = arith.constant 0 : index
    %c0_0 = arith.constant 0 : index
    %c0_1 = arith.constant 0 : index
    %0 = vector.load %arg2[%c0, %c0_0, %c0_1] : memref<1x8x32xf32, #tpu.memory_space<vmem>>, vector<1x8x32xf32>
    %c0_2 = arith.constant 0 : index
    %c0_3 = arith.constant 0 : index
    %1 = vector.load %arg3[%c0_2, %c0_3] : memref<1x32xf32, #tpu.memory_space<vmem>>, vector<1x32xf32>
    %c0_4 = arith.constant 0 : index
    %c0_5 = arith.constant 0 : index
    %2 = vector.load %arg4[%c0_4, %c0_5] : memref<1x32xf32, #tpu.memory_space<vmem>>, vector<1x32xf32>
    %cst = arith.constant dense<0.000000e+00> : vector<1x8xf32>
    %3 = vector.multi_reduction <add>, %0, %cst [2] : vector<1x8x32xf32> to vector<1x8xf32>
    %4 = vector.shape_cast %3 : vector<1x8xf32> to vector<1x8x1xf32>
    %cst_6 = arith.constant 3.200000e+01 : f32
    %5 = vector.broadcast %cst_6 : f32 to vector<1x8x1xf32>
    %6 = arith.divf %4, %5 : vector<1x8x1xf32>
    %7 = vector.broadcast %6 : vector<1x8x1xf32> to vector<1x8x32xf32>
    %8 = arith.subf %0, %7 : vector<1x8x32xf32>
    %9 = arith.mulf %8, %8 : vector<1x8x32xf32>
    %cst_7 = arith.constant dense<0.000000e+00> : vector<1x8xf32>
    %10 = vector.multi_reduction <add>, %9, %cst_7 [2] : vector<1x8x32xf32> to vector<1x8xf32>
    %11 = vector.shape_cast %10 : vector<1x8xf32> to vector<1x8x1xf32>
    %cst_8 = arith.constant 3.200000e+01 : f32
    %12 = vector.broadcast %cst_8 : f32 to vector<1x8x1xf32>
    %13 = arith.divf %11, %12 : vector<1x8x1xf32>
    %cst_9 = arith.constant 9.99999974E-6 : f32
    %14 = vector.broadcast %cst_9 : f32 to vector<1x8x1xf32>
    %15 = arith.addf %13, %14 : vector<1x8x1xf32>
    %16 = math.rsqrt %15 : vector<1x8x1xf32>
    %17 = vector.broadcast %16 : vector<1x8x1xf32> to vector<1x8x32xf32>
    %18 = arith.mulf %8, %17 : vector<1x8x32xf32>
    %19 = vector.shape_cast %1 : vector<1x32xf32> to vector<1x1x32xf32>
    %20 = vector.broadcast %19 : vector<1x1x32xf32> to vector<1x8x32xf32>
    %21 = arith.mulf %18, %20 : vector<1x8x32xf32>
    %22 = vector.shape_cast %2 : vector<1x32xf32> to vector<1x1x32xf32>
    %23 = vector.broadcast %22 : vector<1x1x32xf32> to vector<1x8x32xf32>
    %24 = arith.addf %21, %23 : vector<1x8x32xf32>
    %c0_10 = arith.constant 0 : index
    %c0_11 = arith.constant 0 : index
    %c0_12 = arith.constant 0 : index
    %25 = vector.load %arg5[%c0_10, %c0_11, %c0_12] : memref<1x8x32xf32, #tpu.memory_space<vmem>>, vector<1x8x32xf32>
    tpu.vector_store %arg5[%c0_10, %c0_11, %c0_12], %24 {strides = array<i32>} : memref<1x8x32xf32, #tpu.memory_space<vmem>>, vector<1x8x32xf32>,
    return
  }
  func.func @transform_0(%arg0: i32, %arg1: i32) -> (i32, i32, i32) {
    %c0_i32 = arith.constant 0 : i32
    %c0_i32_0 = arith.constant 0 : i32
    return %arg0, %arg1, %c0_i32 : i32, i32, i32
  }
  func.func @transform_1(%arg0: i32, %arg1: i32) -> (i32, i32) {
    %c0_i32 = arith.constant 0 : i32
    %c0_i32_0 = arith.constant 0 : i32
    %c0_i32_1 = arith.constant 0 : i32
    return %c0_i32, %c0_i32_0 : i32, i32
  }
  func.func @transform_2(%arg0: i32, %arg1: i32) -> (i32, i32) {
    %c0_i32 = arith.constant 0 : i32
    %c0_i32_0 = arith.constant 0 : i32
    %c0_i32_1 = arith.constant 0 : i32
    return %c0_i32, %c0_i32_0 : i32, i32
  }
  func.func @transform_3(%arg0: i32, %arg1: i32) -> (i32, i32, i32) {
    %c0_i32 = arith.constant 0 : i32
    %c0_i32_0 = arith.constant 0 : i32
    return %arg0, %arg1, %c0_i32 : i32, i32, i32
  }
}

</mosaic_0001>

<bundles_post_ra>
// kernel: tpu_custom_call.1
= control target key start
LH: loop header
LB: loop body
LE: loop exit
PB: predicated region body
PF: predicated region fallthrough
CT: control target
= control target key end

     0   :  { %8 = vsyncpa [#allocation3], 0  ;;  %s727_s0 = inlined_call_operand.hbm [shape: f32[2,8,32], index: 0, kind: input, shape index: {}]   ;;  %s728_s1 = inlined_call_operand.vmem [shape: f32[1,32], index: 1, kind: input, shape index: {}]   ;;  %s729_s2 = inlined_call_operand.vmem [shape: f32[1,32], index: 2, kind: input, shape index: {}]   ;;  %s730_s3 = inlined_call_operand.hbm [shape: f32[2,8,32], index: 3, kind: output, shape index: {}]  }
   0x1   :  { %10 = vsyncpa [#allocation3 + $0x1], 0 }
   0x2   :  { %11 = vsyncpa [#allocation4], 0 }
   0x3   :  { %13 = vsyncpa [#allocation4 + $0x1], 0  ;;  %s546_s12 = smov 0   ;;  %s548_s13 = smov 0  }
   0x4   :  { %s550_s14 = smov 0   ;;  %s552_s15 = smov 0  }
   0x5   :  { %s554_s16 = smov 0   ;;  %s556_s17 = smov 0  }
   0x6 LB: > { %s331_s18 = sadd.s32 4294967295, %s522_s17   ;;  %s332_s19 = sadd.s32 4294967294, %s522_s17   ;;  %s522_s17 = sphi %s556_s17, %s19_s17   ;;  %s518_s16 = sphi %s554_s16, %s746_s16   ;;  %s514_s15 = sphi %s552_s15, %s745_s15   ;;  %s510_s14 = sphi %s550_s14, %s744_s14   ;;  %s506_s13 = sphi %s548_s13, %s743_s13   ;;  %s502_s12 = sphi %s546_s12, %s742_s12  }
   0x7   : > { %s31_s20 = sadd.s32 1, %s518_s16  ;;  %s40_s21 = sadd.s32 1, %s510_s14 }
   0x8   : > { %p33_p0 = scmp.ge.s32.totalorder %s31_s20, 2  ;;  %p47_p1 = scmp.ne.s32.totalorder %s510_s14, %s506_s13 }
   0x9   : > { %p48_p2 = scmp.eq.s32.totalorder %s522_s17, 0  ;;  %p53_p3 = scmp.ne.s32.totalorder %s506_s13, %s502_s12 }
   0xa   : > { %s748_s20 = smov (%p33_p0, %s31_s20), 0  ;;  %p54_p5 = scmp.eq.s32.totalorder %s331_s18, 0 }
   0xb   : > { %p587_p4 = por %p48_p2, %p47_p1  ;;  %s35_s23 = ssub.s32 %s518_s16, %s748_s20 }
   0xc   : > { %p121_p6 = scmp.eq.s32.totalorder %s331_s18, 1  ;;  %p38_p7 = scmp.eq.s32.totalorder %s35_s23, 0 }
   0xd   : > { %p593_p8 = por %p54_p5, %p53_p3  ;;  %p127_p10 = scmp.eq.s32.totalorder %s332_s19, 1 }
   0xe   : > { %p597_p9 = por %p121_p6, %p47_p1  ;;  %p358_p13 = scmp.lt.s32.totalorder %s522_s17, 2 }
   0xf   : > { %s602_s26 = scalar_select %p38_p7, %s510_s14, %s40_s21  }
  0x10   : > { %s734_s25 = scalar_select %p597_p9, 1, 0 }
  0x11   : > { %p604_p11 = por %p127_p10, %p53_p3  ;;  %s153_s28 = sand.u32 1, %s510_s14  }
  0x12   : > { %s335_s29 = sshll.u32 %s153_s28, 3  ;;  %s336_s30 = sshll.u32 %s518_s16, 7 }
  0x13   : > { %s735_s27 = scalar_select %p604_p11, 1, 0 }
  0x14   : > { %s615_s6 = scalar_lea.hbm %s727_s0, %s336_s30  ;;  %s157_s7 = scalar_lea.vmem [#allocation2], %s335_s29 }
  0x15   : > { %s165_s8 = sshll.u32 %s157_s7, 4  ;;  %p621_p0 = pnand %p358_p13, %p587_p4  ;;  %s617_s8 = int_to_ptr.vmem [resolvable:$true] %s165_s8 }
  0x16   : > { %s154_s10 = scalar_lea.sflag [#allocation3], %s153_s28  ;;  %s410_s11 = scalar_lea.hbm %s615_s6, 128 }
  0x17   : > { %p411_p3 = scmp.ne.s32.totalorder %s615_s6, %s410_s11  ;;  %p412_p5 = pneg %p621_p0 }
  0x18   : > { %s415_s21 = scalar_lea.hbm %s727_s0, 256  ;;  %p416_p4 = scmp.lt.u32.totalorder %s615_s6, %s727_s0 }
  0x19   : > { %p413_p6 = pnand %p412_p5, %p411_p3  ;;  %p417_p10 = scmp.lt.u32.totalorder %s415_s21, %s410_s11 }
  0x1a   : > { %p419_p12 = scmp.lt.u32.totalorder %s410_s11, %s615_s6 }
  0x1b   : > { %p414_p7 = pneg %p413_p6  ;;  %p418_p13 = por %p417_p10, %p416_p4 }
  0x1d   : > { %p420_p1 = por %p419_p12, %p418_p13 }
  0x1f   : > { %p421_p2 = pnand %p420_p1, %p414_p7 }
  0x21   : > { %424 = shalt.err (!%p421_p2)
}
  0x22   : > { %s425_s28 = scalar_lea.vmem %s617_s8, 128  ;;  %s524_s29 = smov [#allocation2]  }
  0x23   : > { %p426_p3 = scmp.ne.s32.totalorder %s617_s8, %s425_s28  ;;  %s430_s30 = sshll.u32 %s524_s29, 4  ;;  %s431_s30 = int_to_ptr.vmem [resolvable:$false] %s430_s30 }
  0x24   : > { %s432_s4 = scalar_lea.vmem %s431_s30, 256  ;;  %p433_p9 = scmp.lt.s32.totalorder %s617_s8, %s431_s30 }
  0x25   : > { %p428_p6 = pnand %p426_p3, %p412_p5  ;;  %p434_p4 = scmp.lt.s32.totalorder %s432_s4, %s425_s28 }
  0x27   : > { %p429_p11 = pneg %p428_p6  ;;  %p435_p10 = por %p434_p4, %p433_p9 }
  0x29   : > { %p436_p12 = pnand %p435_p10, %p429_p11 }
  0x2b   : > { %439 = shalt.err (!%p436_p12)
}
  0x2c   : > { %353 = dma.hbm_to_vmem [thread:$0]  (!%p621_p0), %s615_s6, 128, %s617_s8, %s154_s10  }
  0x2d   : > { %p737_p1 = scmp.lt.s32.totalorder %s522_s17, 3  ;;  %p738_p2 = scmp.ge.s32.totalorder %s522_s17, 1 }
  0x2f   : > { %p171_p5 = pnand %p738_p2, %p737_p1 }
  0x30   : > { %s657_s5 = sand.u32 (!%p171_p5), 1, %s506_s13  }
  0x31   : > { %174 = sbr.rel (%p171_p5) target bundleno = 385 (0x181), region = 32  ;;  %s338_s7 = sshll.u32 (!%p171_p5), %s657_s5, 3 }
  0x32   : > { %s177_s11 = scalar_lea.sflag (!%p171_p5), [#allocation3], %s657_s5  ;;  %s180_s18 = scalar_lea.vmem (!%p171_p5), [#allocation2], %s338_s7 }
  0x38   : > { %493 = dma.done.wait (%p593_p8), %s177_s11, 128  }
  0x39   : > { %495 = vsyncadd (%p593_p8), %s177_s11, 4294967168  ;;  %vm206_vm0 = vcmask 261120   ;;  %v203_v0 = vld [vmem:[%s180_s18] sm:$0xff]  ;;  %s343_s10 = sshll.u32 %s514_s15, 7  ;;  %s202_s19 = scalar_lea.vmem [#allocation5], %s338_s7 }
  0x3a   : > { %v207_v1 = vsel %vm206_vm0, %v203_v0, 0.0  ;;  %v340_v11 = vld [vmem:[%s728_s1] ss:$0 sm:$0xff]  ;;  %s251_s21 = sshll.u32 %s202_s19, 4  ;;  %s677_s28 = scalar_lea.hbm %s730_s3, %s343_s10  ;;  %s679_s21 = int_to_ptr.vmem [resolvable:$true] %s251_s21 }
  0x3b   : > { %208 = vadd.xlane.f32.xlu0 %v207_v1  ;;  %v341_v13 = vld [vmem:[%s729_s2] ss:$0 sm:$0xff]  ;;  %s237_s29 = scalar_lea.sflag [#allocation4], %s657_s5  ;;  %s440_s30 = scalar_lea.vmem %s679_s21, 128 }
  0x3c   : > { %p441_p8 = scmp.ne.s32.totalorder %s679_s21, %s440_s30  ;;  %p739_p9 = scmp.ne.s32.totalorder %s734_s25, 0 }
  0x3d   : > { %s525_s15 = smov [#allocation5]  }
  0x3e   : > { %p442_p11 = pnand %p441_p8, %p739_p9  ;;  %s444_s4 = sshll.u32 %s525_s15, 4  ;;  %s445_s4 = int_to_ptr.vmem [resolvable:$false] %s444_s4 }
  0x3f   : > { %s446_s7 = scalar_lea.vmem %s445_s4, 256  ;;  %p447_p7 = scmp.lt.s32.totalorder %s679_s21, %s445_s4 }
  0x40   : > { %p443_p0 = pneg %p442_p11  ;;  %p448_p13 = scmp.lt.s32.totalorder %s446_s7, %s440_s30 }
  0x42   : > { %p449_p3 = por %p448_p13, %p447_p7 }
  0x44   : > { %p450_p6 = pnand %p449_p3, %p443_p0 }
  0xc8   : > { %v209_v2 = vpop.xlane.xlu0 %208 }
  0xc9   : > { %v211_v3 = vmul.f32 0.03125, %v209_v2 }
  0xcb   : > { %v212_v4 = vsub.f32 %v203_v0, %v211_v3 }
  0xcd   : > { %v213_v5 = vmul.f32 %v212_v4, %v212_v4 }
  0xcf   : > { %v214_v6 = vsel %vm206_vm0, %v213_v5, 0.0 }
  0xd0   : > { %215 = vadd.xlane.f32.xlu0 %v214_v6 }
 0x15d   : > { %v216_v7 = vpop.xlane.xlu0 %215 }
 0x15e   : > { %v217_v8 = vmul.f32 0.03125, %v216_v7 }
 0x160   : > { %v218_v9 = vadd.f32 1e-05, %v217_v8 }
 0x162   : > { %408 = vrsqrt.f32 %v218_v9 }
 0x16c   : > { %v409_v10 = vpop.eup %408 }
 0x16d   : > { %v220_v12 = vmul.f32 %v409_v10, %v212_v4 }
 0x16f   : > { %v227_v14 = vmul.f32 %v340_v11, %v220_v12 }
 0x171   : > { %v234_v15 = vadd.f32 %v341_v13, %v227_v14 }
 0x173   : > { %235 = vst.msk [vmem:[%s202_s19] sm:$0xff] %vm206_vm0, %v234_v15 }
 0x174   : > { %453 = shalt.err (!%p450_p6)
}
 0x175   : > { %s454_s5 = scalar_lea.hbm %s677_s28, 128  ;;  %s458_s24 = scalar_lea.hbm %s730_s3, 256 }
 0x176   : > { %p455_p4 = scmp.ne.s32.totalorder %s677_s28, %s454_s5  ;;  %p459_p1 = scmp.lt.u32.totalorder %s677_s28, %s730_s3 }
 0x177   : > { %p460_p2 = scmp.lt.u32.totalorder %s458_s24, %s454_s5  ;;  %p462_p8 = scmp.lt.u32.totalorder %s454_s5, %s677_s28 }
 0x178   : > { %p456_p10 = pnand %p455_p4, %p739_p9 }
 0x179   : > { %p461_p5 = por %p460_p2, %p459_p1 }
 0x17a   : > { %p457_p12 = pneg %p456_p10 }
 0x17b   : > { %p463_p11 = por %p462_p8, %p461_p5 }
 0x17d   : > { %p464_p0 = pnand %p463_p11, %p457_p12 }
 0x17f   : > { %467 = shalt.err (!%p464_p0)
}
 0x180   : > { %348 = dma.vmem_to_hbm [thread:$0]  (%p739_p9), %s679_s21, 128, %s677_s28, %s237_s29  }
 0x181 PF: > { %s263_s9 = sand.u32 1, %s502_s12   ;;  %p740_p7 = scmp.ne.s32.totalorder %s735_s27, 0 }
 0x182   : > { %p741_p13 = scmp.ge.s32.totalorder %s522_s17, 2  ;;  %s264_s10 = scalar_lea.sflag [#allocation4], %s263_s9 }
 0x184   : > { %p355_p3 = pnand %p741_p13, %p740_p7 }
 0x186   : > { %497 = dma.done.wait (!%p355_p3), %s264_s10, 128  }
 0x187   : > { %499 = vsyncadd (!%p355_p3), %s264_s10, 4294967168  ;;  %s19_s17 = sadd.s32 1, %s522_s17   ;;  %s742_s12 = smov %s506_s13 }
 0x188   : > { %p16_p6 = scmp.ge.s32.totalorder %s19_s17, 4   ;;  %s743_s13 = smov %s510_s14 }
 0x189   : > { %s744_s14 = smov %s602_s26  ;;  %s745_s15 = smov %s518_s16 }
 0x18a   : > { %s746_s16 = smov %s748_s20  ;;  %18 = sbr.rel (!%p16_p6) target bundleno = 6 (0x6), region = 77 }
 0x191   :  { %269 = vsyncpa [#allocation3], 1 }
 0x192   :  { %271 = vsyncpa [#allocation3 + $0x1], 1 }
 0x193   :  { %272 = vsyncpa [#allocation4], 1 }
 0x194   :  { %274 = vsyncpa [#allocation4 + $0x1], 1 }

</bundles_post_ra>
